<compile_context>
chip_gen: v6e
topology: v6e:2x2x1
jax: 0.10.0
libtpu: 0.0.40
codegen_flags: <defaults>
</compile_context>

<pallas_src>
import jax
import jax.numpy as jnp
from jax.experimental import pallas as pl
from jax.experimental.pallas import tpu as pltpu


def decoder_kernel(x_ref, w1t_ref, b1_ref, w2t_ref, b2_ref, out_ref):
    # x: [TB, z], w1t: [z, H], b1: [1, H], w2t: [H, O], b2: [1, O]
    h = jnp.dot(x_ref[...], w1t_ref[...], preferred_element_type=jnp.float32)
    h = jnp.maximum(h + b1_ref[...], 0.0)          # (TB, H) + (1, H) broadcast
    y = jnp.dot(h, w2t_ref[...], preferred_element_type=jnp.float32)
    out_ref[...] = (y + b2_ref[...]).astype(out_ref.dtype)


def _round_up(n, m):
    return ((n + m - 1) // m) * m


def decoder_forward(x, w1, b1, w2, b2, *, batch_tile=2048):
    """x: [B, z_dim]; w1: [hidden, z_dim]; b1: [hidden];
    w2: [output, hidden]; b2: [output]   (PyTorch nn.Linear conventions)."""
    B, z_dim = x.shape
    hidden_dim = w1.shape[0]
    output_dim = w2.shape[0]
    out_shape = jax.ShapeDtypeStruct((B, output_dim), x.dtype)

    # One-time tiny relayouts: MXU-natural [K, N] weights, 2-D biases.
    w1t = w1.T                      # (z_dim, hidden)
    w2t = w2.T                      # (hidden, output)
    b1_2d = b1.reshape(1, hidden_dim)
    b2_2d = b2.reshape(1, output_dim)

    flops = 2 * B * (z_dim * hidden_dim + hidden_dim * output_dim)
    bytes_accessed = 4 * (B * (z_dim + output_dim)
                          + hidden_dim * z_dim + hidden_dim
                          + output_dim * hidden_dim + output_dim)
    cost = pl.CostEstimate(flops=flops, transcendentals=0,
                           bytes_accessed=bytes_accessed)

    if B > batch_tile:
        # Tiled path: tile the batch, keep weights/biases resident in VMEM.
        # Cap the tile so there are at least ~4 grid steps (>= 2 per v7x TC),
        # keep it a multiple of 8 (sublane alignment of the row blocks).
        tb = min(batch_tile, _round_up(pl.cdiv(B, 4), 8))
        tb = max(8, _round_up(tb, 8))
        grid = (pl.cdiv(B, tb),)     # partial last tile is safe (row-wise op)
        return pl.pallas_call(
            decoder_kernel,
            out_shape=out_shape,
            grid=grid,
            in_specs=[
                pl.BlockSpec((tb, z_dim), lambda i: (i, 0)),
                pl.BlockSpec((z_dim, hidden_dim), lambda i: (0, 0)),
                pl.BlockSpec((1, hidden_dim), lambda i: (0, 0)),
                pl.BlockSpec((hidden_dim, output_dim), lambda i: (0, 0)),
                pl.BlockSpec((1, output_dim), lambda i: (0, 0)),
            ],
            out_specs=pl.BlockSpec((tb, output_dim), lambda i: (i, 0)),
            compiler_params=pltpu.CompilerParams(
                dimension_semantics=("parallel",)),
            cost_estimate=cost,
        )(x, w1t, b1_2d, w2t, b2_2d)

    # Small-batch path: no grid, full-array VMEM blocks -> no per-step overhead.
    vmem = pltpu.MemorySpace.VMEM
    return pl.pallas_call(
        decoder_kernel,
        out_shape=out_shape,
        in_specs=[pl.BlockSpec(memory_space=vmem)] * 5,
        out_specs=pl.BlockSpec(memory_space=vmem),
        cost_estimate=cost,
    )(x, w1t, b1_2d, w2t, b2_2d)


def reference_forward(x, w1, b1, w2, b2):
    h = jnp.maximum(x @ w1.T + b1, 0.0)
    return h @ w2.T + b2


if __name__ == "__main__":
    # Small shapes consistent with the module's forward.
    z_dim, hidden_dim, output_dim = 16, 32, 64

    key = jax.random.PRNGKey(0)
    kx, k1, k2, k3, k4, kx2 = jax.random.split(key, 6)

    # Deterministic parameter init, mimicking PyTorch nn.Linear default
    # (uniform in +/- 1/sqrt(fan_in)).
    bound1 = 1.0 / (z_dim ** 0.5)
    bound2 = 1.0 / (hidden_dim ** 0.5)
    w1 = jax.random.uniform(k1, (hidden_dim, z_dim), jnp.float32, -bound1, bound1)
    b1 = jax.random.uniform(k2, (hidden_dim,), jnp.float32, -bound1, bound1)
    w2 = jax.random.uniform(k3, (output_dim, hidden_dim), jnp.float32, -bound2, bound2)
    b2 = jax.random.uniform(k4, (output_dim,), jnp.float32, -bound2, bound2)

    # 1) Small batch -> gridless full-VMEM path.
    batch = 8
    x = jax.random.normal(kx, (batch, z_dim), jnp.float32)
    out = jax.block_until_ready(decoder_forward(x, w1, b1, w2, b2))
    ref = reference_forward(x, w1, b1, w2, b2)
    assert out.shape == (batch, output_dim)
    assert jnp.allclose(out, ref, atol=1e-5, rtol=1e-5)

    # 2) Larger, non-multiple batch -> cdiv-tiled path with resident weights,
    #    partial last tile, and >= 4 grid steps ("parallel" batch axis).
    batch2 = 4100
    x2 = jax.random.normal(kx2, (batch2, z_dim), jnp.float32)
    out2 = jax.block_until_ready(
        decoder_forward(x2, w1, b1, w2, b2, batch_tile=1024))
    ref2 = reference_forward(x2, w1, b1, w2, b2)
    assert out2.shape == (batch2, output_dim)
    assert jnp.allclose(out2, ref2, atol=1e-5, rtol=1e-5)

    print("KERNEL_OK")
</pallas_src>

<mosaic_0001>
module attributes {stable_mosaic.version = 11 : i64} {
  func.func @decoder_kernel(%arg0: memref<8x16xf32, #tpu.memory_space<vmem>>, %arg1: memref<16x32xf32, #tpu.memory_space<vmem>>, %arg2: memref<1x32xf32, #tpu.memory_space<vmem>>, %arg3: memref<32x64xf32, #tpu.memory_space<vmem>>, %arg4: memref<1x64xf32, #tpu.memory_space<vmem>>, %arg5: memref<8x64xf32, #tpu.memory_space<vmem>>) attributes {dimension_semantics = [], scalar_prefetch = 0 : i64, scratch_operands = 0 : i64, tpu.core_type = #tpu.core_type<tc>} {
    %c0 = arith.constant 0 : index
    %c0_0 = arith.constant 0 : index
    %0 = vector.load %arg0[%c0, %c0_0] : memref<8x16xf32, #tpu.memory_space<vmem>>, vector<8x16xf32>
    %c0_1 = arith.constant 0 : index
    %c0_2 = arith.constant 0 : index
    %1 = vector.load %arg1[%c0_1, %c0_2] : memref<16x32xf32, #tpu.memory_space<vmem>>, vector<16x32xf32>
    %cst = arith.constant dense<0.000000e+00> : vector<8x32xf32>
    %2 = tpu.matmul %0, %1, %cst {dimension_numbers = #tpu.dot_dimension_numbers<[1], [0], [0], [1], [0, 0, 1, 1], [], []>} : vector<8x16xf32>, vector<16x32xf32>, vector<8x32xf32> -> vector<8x32xf32>
    %c0_3 = arith.constant 0 : index
    %c0_4 = arith.constant 0 : index
    %3 = vector.load %arg2[%c0_3, %c0_4] : memref<1x32xf32, #tpu.memory_space<vmem>>, vector<1x32xf32>
    %4 = vector.broadcast %3 : vector<1x32xf32> to vector<8x32xf32>
    %5 = arith.addf %2, %4 : vector<8x32xf32>
    %cst_5 = arith.constant 0.000000e+00 : f32
    %6 = vector.broadcast %cst_5 : f32 to vector<8x32xf32>
    %7 = arith.maximumf %5, %6 : vector<8x32xf32>
    %c0_6 = arith.constant 0 : index
    %c0_7 = arith.constant 0 : index
    %8 = vector.load %arg3[%c0_6, %c0_7] : memref<32x64xf32, #tpu.memory_space<vmem>>, vector<32x64xf32>
    %cst_8 = arith.constant dense<0.000000e+00> : vector<8x64xf32>
    %9 = tpu.matmul %7, %8, %cst_8 {dimension_numbers = #tpu.dot_dimension_numbers<[1], [0], [0], [1], [0, 0, 1, 1], [], []>} : vector<8x32xf32>, vector<32x64xf32>, vector<8x64xf32> -> vector<8x64xf32>
    %c0_9 = arith.constant 0 : index
    %c0_10 = arith.constant 0 : index
    %10 = vector.load %arg4[%c0_9, %c0_10] : memref<1x64xf32, #tpu.memory_space<vmem>>, vector<1x64xf32>
    %11 = vector.broadcast %10 : vector<1x64xf32> to vector<8x64xf32>
    %12 = arith.addf %9, %11 : vector<8x64xf32>
    %c0_11 = arith.constant 0 : index
    %c0_12 = arith.constant 0 : index
    %13 = vector.load %arg5[%c0_11, %c0_12] : memref<8x64xf32, #tpu.memory_space<vmem>>, vector<8x64xf32>
    tpu.vector_store %arg5[%c0_11, %c0_12], %12 {strides = array<i32>} : memref<8x64xf32, #tpu.memory_space<vmem>>, vector<8x64xf32>,
    return
  }
}

</mosaic_0001>

<bundles_post_ra>
// kernel: tpu_custom_call.1
= control target key start
LH: loop header
LB: loop body
LE: loop exit
PB: predicated region body
PF: predicated region fallthrough
CT: control target
= control target key end

     0   :  { %10 = vsyncpa [#allocation3], 0  ;;  %s428_s0 = inlined_call_operand.hbm [shape: f32[8,16], index: 0, kind: input, shape index: {}]   ;;  %s429_s1 = inlined_call_operand.hbm [shape: f32[16,32], index: 1, kind: input, shape index: {}]   ;;  %s430_s2 = inlined_call_operand.vmem [shape: f32[1,32], index: 2, kind: input, shape index: {}]   ;;  %s431_s3 = inlined_call_operand.hbm [shape: f32[32,64], index: 3, kind: input, shape index: {}]   ;;  %s432_s4 = inlined_call_operand.vmem [shape: f32[1,64], index: 4, kind: input, shape index: {}]   ;;  %s433_s5 = inlined_call_operand.hbm [shape: f32[8,64], index: 5, kind: output, shape index: {}]  }
   0x1   :  { %11 = vsyncpa [#allocation6], 0 }
   0x2   :  { %12 = vsyncpa [#allocation4], 0  ;;  %s372_s18 = smov [#allocation5]  }
   0x3   :  { %s28_s19 = sshll.u32 %s372_s18, 4  ;;  %s29_s19 = int_to_ptr.vmem [resolvable:$true] %s28_s19 }
   0x4   :  { %s294_s20 = scalar_lea.vmem %s29_s19, 256  ;;  %p299_p1 = scmp.lt.s32.totalorder %s29_s19, %s29_s19 }
   0x5   :  { %p295_p0 = scmp.ne.s32.totalorder %s29_s19, %s294_s20  ;;  %p300_p2 = scmp.lt.s32.totalorder %s294_s20, %s294_s20 }
   0x7   :  { %p301_p3 = por %p300_p2, %p299_p1 }
   0x9   :  { %p302_p4 = pnand %p301_p3, %p295_p0 }
   0xb   :  { %305 = shalt.err (!%p302_p4)
}
   0xc   :  { %s373_s21 = smov 128   ;;  %s374_s22 = smov 8  }
   0xd   :  { %34 = dma.hbm_to_vmem [thread:$0]  %s429_s1, 256, %s29_s19, [#allocation6], %s373_s21, %s373_s21, %s374_s22  }
   0xe   :  { %s375_s25 = smov [#allocation2]   ;;  %s376_s27 = smov [#allocation7]  }
   0xf   :  { %s19_s26 = sshll.u32 %s375_s25, 4  ;;  %s42_s28 = sshll.u32 %s376_s27, 4  ;;  %s20_s26 = int_to_ptr.vmem [resolvable:$true] %s19_s26  ;;  %s43_s28 = int_to_ptr.vmem [resolvable:$true] %s42_s28 }
  0x10   :  { %s314_s29 = scalar_lea.vmem %s20_s26, 128  ;;  %p319_p6 = scmp.lt.s32.totalorder %s20_s26, %s20_s26 }
  0x11   :  { %p315_p5 = scmp.ne.s32.totalorder %s20_s26, %s314_s29  ;;  %p320_p7 = scmp.lt.s32.totalorder %s314_s29, %s314_s29 }
  0x13   :  { %p321_p8 = por %p320_p7, %p319_p6 }
  0x15   :  { %p322_p9 = pnand %p321_p8, %p315_p5 }
  0x17   :  { %325 = shalt.err (!%p322_p9)
}
  0x18   :  { %22 = dma.hbm_to_vmem [thread:$0]  %s428_s0, 128, %s20_s26, [#allocation3]  }
  0x19   :  { %s334_s7 = scalar_lea.vmem %s43_s28, 512  ;;  %p339_p11 = scmp.lt.s32.totalorder %s43_s28, %s43_s28 }
  0x1a   :  { %p335_p10 = scmp.ne.s32.totalorder %s43_s28, %s334_s7  ;;  %p340_p12 = scmp.lt.s32.totalorder %s334_s7, %s334_s7 }
  0x1c   :  { %p341_p13 = por %p340_p12, %p339_p11 }
  0x1e   :  { %p342_p0 = pnand %p341_p13, %p335_p10 }
  0x20   :  { %345 = shalt.err (!%p342_p0)
}
  0x21   :  { %48 = dma.hbm_to_vmem [thread:$0]  %s431_s3, 512, %s43_s28, [#allocation6], %s373_s21, %s373_s21, %s374_s22  }
  0x22   :  { %366 = dma.done.wait [#allocation3], 128  }
  0x23   :  { %367 = vsyncadd [#allocation3], 4294967168 }
  0x24   :  { %368 = dma.done.wait [#allocation6], 768  }
  0x25   :  { %369 = vsyncadd [#allocation6], 4294966528  ;;  %v377_v0 = vmov 0.0   ;;  %vm378_vm0 = vmmov 0   ;;  %v62_v1 = vld [vmem:[#allocation5 + $0x8] sm:$0xff]  ;;  %v61_v2 = vld [vmem:[#allocation5] sm:$0xff] }
  0x26   :  { %260 = vmatprep.subr.mxu0 %v377_v0  ;;  %264 = vmatprep.mubr.msk.f32.mxu0 %vm378_vm0, %v377_v0  ;;  %v60_v3 = vld [vmem:[#allocation2] sm:$0xff]  ;;  %vm70_vm1 = vcmask 130048   ;;  %v148_v4 = vld [vmem:[#allocation7 + $0x18] sm:$0xff]  ;;  %v147_v5 = vld [vmem:[#allocation7 + $0x10] sm:$0xff]  ;;  %vm156_vm2 = vcmask 261120   ;;  %s379_s11 = smov [#allocation8]  }
  0x27   :  { %267 = vmatprep.subr.mxu1 %v377_v0  ;;  %275 = vmatprep.mubr.msk.f32.mxu1 %vm378_vm0, %v377_v0  ;;  %v146_v6 = vld [vmem:[#allocation7 + $0x8] sm:$0xff]  ;;  %v145_v7 = vld [vmem:[#allocation7] sm:$0xff]  ;;  %s238_s12 = sshll.u32 %s379_s11, 4  ;;  %vm230_vm3 = vcmask 523264   ;;  %s239_s12 = int_to_ptr.vmem [resolvable:$true] %s238_s12 }
  0x28   :  { %261 = vmatpush3.msra.mxu0 %v62_v1  ;;  %268 = vmatpush3.msra.mxu1 %v148_v4  ;;  %v248_v8 = vld [vmem:[%s430_s2] ss:$0 sm:$0xff]  ;;  %s346_s13 = scalar_lea.vmem %s239_s12, 128  ;;  %p351_p2 = scmp.lt.s32.totalorder %s239_s12, %s239_s12 }
  0x29   :  { %262 = vmatprep.subr.mxu0 %v377_v0  ;;  %269 = vmatprep.subr.mxu1 %v377_v0  ;;  %v250_v13 = vld [vmem:[%s432_s4] ss:$0 sm:$0xff]  ;;  %p347_p1 = scmp.ne.s32.totalorder %s239_s12, %s346_s13  ;;  %p352_p3 = scmp.lt.s32.totalorder %s346_s13, %s346_s13 }
  0x2a   :  { %263 = vmatpush3.msra.mxu0 %v61_v2  ;;  %270 = vmatpush3.msra.mxu1 %v147_v5 }
  0x2b   :  { %265 = vmatmul.mubr.msk.f32.vlgmr.msra.gmra.mxu0 %vm70_vm1, %v60_v3  ;;  %271 = vmatprep.subr.mxu1 %v377_v0  ;;  %p353_p4 = por %p352_p3, %p351_p2 }
  0x2c   :  { %272 = vmatpush3.msra.mxu1 %v146_v6 }
  0x2d   :  { %273 = vmatprep.subr.mxu1 %v377_v0  ;;  %p354_p5 = pnand %p353_p4, %p347_p1 }
  0x2e   :  { %274 = vmatpush3.msra.mxu1 %v145_v7 }
  0xeb   :  { %v140_v9 = vpop.f32.mrf.mxu0 }
  0xec   :  { %v141_v10 = vadd.f32 %v248_v8, %v140_v9 }
  0xed   :  { %v266_v11 = vpop.f32.mrf.mxu0 }
  0xee   :  { %v144_v12 = vmax.f32 %v141_v10, 0.0 }
  0xf0   :  { %276 = vmatmul.mubr.msk.f32.vlgmr.msra.gmra.mxu1 %vm156_vm2, %v144_v12 }
 0x1b0   :  { %v226_v14 = vpop.f32.mrf.mxu1 }
 0x1b1   :  { %v227_v15 = vadd.f32 %v250_v13, %v226_v14 }
 0x1b2   :  { %v277_v16 = vpop.f32.mrf.mxu1 }
 0x1b3   :  { %231 = vst.msk [vmem:[#allocation8] sm:$0xff] %vm230_vm3, %v227_v15 }
 0x1b4   :  { %357 = shalt.err (!%p354_p5)
}
 0x1b5   :  { %241 = dma.vmem_to_hbm [thread:$0]  %s239_s12, 128, %s433_s5, [#allocation4]  }
 0x1b6   :  { %370 = dma.done.wait [#allocation4], 128  }
 0x1b7   :  { %371 = vsyncadd [#allocation4], 4294967168 }
 0x1b8   :  { %245 = vsyncpa [#allocation3], 1 }
 0x1b9   :  { %246 = vsyncpa [#allocation6], 1 }
 0x1ba   :  { %247 = vsyncpa [#allocation4], 1 }

</bundles_post_ra>
